<compile_context>
chip_gen: v7x
topology: tpu7x:2x2x1
jax: 0.10.0
libtpu: 0.0.40
codegen_flags: <defaults>
</compile_context>

<pallas_src>
import functools
import math

import jax
import jax.numpy as jnp
from jax.experimental import pallas as pl
from jax.experimental.pallas import tpu as pltpu

_LANE = 128


def _round_up(x, m):
    return (x + m - 1) // m * m


def policy_kernel(state_ref, w1_ref, b1_ref, w2_ref, b2_ref, w3_ref, b3_ref,
                  out_ref, *, num_actions):
    # linear1 + relu  (bf16 MXU inputs, f32 accumulate; epilogue in f32 so the
    # kernel is portable across v5e/v6e/v7x VPUs)
    x = state_ref[...].astype(jnp.bfloat16)
    h1 = jnp.dot(x, w1_ref[...], preferred_element_type=jnp.float32)
    h1 = jnp.maximum(h1 + b1_ref[...], 0.0)

    # linear2 + relu
    h2 = jnp.dot(h1.astype(jnp.bfloat16), w2_ref[...],
                 preferred_element_type=jnp.float32)
    h2 = jnp.maximum(h2 + b2_ref[...], 0.0)

    # linear3 + sigmoid (bf16 MXU inputs, f32 accumulate/epilogue)
    y = jnp.dot(h2.astype(jnp.bfloat16), w3_ref[...],
                preferred_element_type=jnp.float32)
    y = jax.nn.sigmoid(y + b3_ref[...])

    # The action dim is zero-padded to a lane-dense width; zero the padded
    # lanes (sigmoid(0) == 0.5 would otherwise pollute the L2 norm).
    a_pad = out_ref.shape[-1]
    if num_actions < a_pad:
        col = jax.lax.broadcasted_iota(jnp.int32, (1, a_pad), 1)
        y = jnp.where(col < num_actions, y, 0.0)

    # F.normalize(y, p=2, dim=1): y / max(||y||, 1e-12) == y * rsqrt(max(||y||^2, 1e-24))
    norm2 = jnp.sum(y * y, axis=-1, keepdims=True)
    out_ref[...] = (y * jax.lax.rsqrt(jnp.maximum(norm2, 1e-24))).astype(out_ref.dtype)


def prepare_params(params):
    """One-time cast/pad of f32 [in,out] params into kernel layout.

    Weights -> bf16, biases -> f32; linear3 is zero-padded along the action dim
    up to a multiple of 128 lanes so the kernel's output store is lane-dense.
    Returns (kernel_params, num_actions).
    """
    num_actions = int(params["w3"].shape[1])
    a_pad = _round_up(max(num_actions, _LANE), _LANE)
    w3 = jnp.zeros((params["w3"].shape[0], a_pad), jnp.bfloat16)
    w3 = w3.at[:, :num_actions].set(params["w3"].astype(jnp.bfloat16))
    b3 = jnp.zeros((1, a_pad), jnp.float32)
    b3 = b3.at[:, :num_actions].set(params["b3"].astype(jnp.float32))
    kparams = dict(
        w1=params["w1"].astype(jnp.bfloat16),
        b1=params["b1"].astype(jnp.float32),
        w2=params["w2"].astype(jnp.bfloat16),
        b2=params["b2"].astype(jnp.float32),
        w3=w3,
        b3=b3,
    )
    return kparams, num_actions


@functools.partial(jax.jit, static_argnames=("num_actions", "batch_tile"))
def policy_forward(state, kparams, *, num_actions, batch_tile=2048):
    """state: [B, num_states] float32. kparams: output of prepare_params."""
    w1, b1 = kparams["w1"], kparams["b1"]
    w2, b2 = kparams["w2"], kparams["b2"]
    w3, b3 = kparams["w3"], kparams["b3"]

    B, S = state.shape
    H1 = w1.shape[1]
    H2 = w2.shape[1]
    A_pad = w3.shape[1]

    # Batch tile: sublane-aligned; once there is enough work, cap the tile so
    # the grid has >= 2 steps and both v7x TensorCores get a share of the
    # "parallel" batch axis. Large batches stream in batch_tile-row tiles.
    tb = min(batch_tile, _round_up(B, 8))
    if B >= 64:
        tb = min(tb, _round_up(-(-B // 2), 8))
    tb = max(tb, 8)
    B_pad = _round_up(B, tb)
    if B_pad != B:
        state = jnp.pad(state, ((0, B_pad - B), (0, 0)))
    grid = (B_pad // tb,)

    const = lambda i: (0, 0)  # weights stay resident: DMA'd once, reused per tile

    flops = 2 * B_pad * (S * H1 + H1 * H2 + H2 * A_pad)
    bytes_accessed = (state.size * state.dtype.itemsize
                      + sum(int(a.size) * a.dtype.itemsize
                            for a in (w1, b1, w2, b2, w3, b3))
                      + B_pad * A_pad * 4)

    out = pl.pallas_call(
        functools.partial(policy_kernel, num_actions=num_actions),
        out_shape=jax.ShapeDtypeStruct((B_pad, A_pad), jnp.float32),
        grid=grid,
        in_specs=[
            pl.BlockSpec((tb, S), lambda i: (i, 0)),    # streamed batch tile
            pl.BlockSpec((S, H1), const),
            pl.BlockSpec((1, H1), const),
            pl.BlockSpec((H1, H2), const),
            pl.BlockSpec((1, H2), const),
            pl.BlockSpec((H2, A_pad), const),
            pl.BlockSpec((1, A_pad), const),
        ],
        out_specs=pl.BlockSpec((tb, A_pad), lambda i: (i, 0)),
        compiler_params=pltpu.CompilerParams(
            dimension_semantics=("parallel",),
            vmem_limit_bytes=32 * 1024 * 1024,
        ),
        cost_estimate=pl.CostEstimate(
            flops=flops,
            transcendentals=B_pad * (A_pad + 1),
            bytes_accessed=bytes_accessed,
        ),
    )(state, w1, b1, w2, b2, w3, b3)
    return out[:B, :num_actions]


def policy_reference(state, params):
    """Pure-JAX f32 reference matching the PyTorch forward."""
    h1 = jnp.maximum(state @ params["w1"] + params["b1"], 0.0)
    h2 = jnp.maximum(h1 @ params["w2"] + params["b2"], 0.0)
    y = jax.nn.sigmoid(h2 @ params["w3"] + params["b3"])
    norm = jnp.maximum(jnp.linalg.norm(y, axis=1, keepdims=True), 1e-12)
    return y / norm


def init_params(key, num_states, num_actions, init_w=0.003):
    """Deterministic init mirroring PyTorch defaults.

    nn.Linear default: U(-1/sqrt(fan_in), 1/sqrt(fan_in)) for weight and bias.
    linear3 is overridden to U(-init_w, init_w) as in the module __init__.
    Weights stored as [in, out] (transposed vs. torch) so the kernel does x @ W.
    """
    k1, k2, k3, k4, k5, k6 = jax.random.split(key, 6)

    def lin(kw, kb, fan_in, fan_out, bound):
        w = jax.random.uniform(kw, (fan_in, fan_out), jnp.float32, -bound, bound)
        b = jax.random.uniform(kb, (1, fan_out), jnp.float32, -bound, bound)
        return w, b

    w1, b1 = lin(k1, k2, num_states, 256, 1.0 / math.sqrt(num_states))
    w2, b2 = lin(k3, k4, 256, 128, 1.0 / math.sqrt(256))
    w3, b3 = lin(k5, k6, 128, num_actions, init_w)
    return dict(w1=w1, b1=b1, w2=w2, b2=b2, w3=w3, b3=b3)


if __name__ == "__main__":
    num_states = 16
    num_actions = 8
    batch = 8

    key = jax.random.PRNGKey(0)
    pkey, skey = jax.random.split(key)
    params = init_params(pkey, num_states, num_actions)
    kparams, A = prepare_params(params)   # one-time cast/pad, reused across calls

    state = jax.random.normal(skey, (batch, num_states), dtype=jnp.float32)
    out = jax.block_until_ready(policy_forward(state, kparams, num_actions=A))

    assert out.shape == (batch, num_actions)
    # sanity: each output row is L2-normalized and strictly positive (sigmoid)
    row_norms = jnp.linalg.norm(out, axis=1)
    assert bool(jnp.all(jnp.abs(row_norms - 1.0) < 1e-3))
    assert bool(jnp.all(out > 0.0))
    # direct f32 reference comparison (bf16 MXU inputs -> ~1e-2 level drift)
    ref = policy_reference(state, params)
    assert float(jnp.max(jnp.abs(out - ref))) < 5e-2

    # exercise the multi-tile / padded-batch / megacore-split path once
    big_state = jax.random.normal(skey, (1000, num_states), dtype=jnp.float32)
    big_out = jax.block_until_ready(policy_forward(big_state, kparams, num_actions=A))
    assert big_out.shape == (1000, num_actions)
    big_norms = jnp.linalg.norm(big_out, axis=1)
    assert bool(jnp.all(jnp.abs(big_norms - 1.0) < 1e-3))
    big_ref = policy_reference(big_state, params)
    assert float(jnp.max(jnp.abs(big_out - big_ref))) < 5e-2

    print("KERNEL_OK")
</pallas_src>

<mosaic_0001>
module attributes {stable_mosaic.version = 11 : i64} {
  func.func @policy_kernel(%arg0: i32, %arg1: memref<8x16xf32, #tpu.memory_space<vmem>>, %arg2: memref<16x256xbf16, #tpu.memory_space<vmem>>, %arg3: memref<1x256xf32, #tpu.memory_space<vmem>>, %arg4: memref<256x128xbf16, #tpu.memory_space<vmem>>, %arg5: memref<1x128xf32, #tpu.memory_space<vmem>>, %arg6: memref<128x128xbf16, #tpu.memory_space<vmem>>, %arg7: memref<1x128xf32, #tpu.memory_space<vmem>>, %arg8: memref<8x128xf32, #tpu.memory_space<vmem>>) attributes {dimension_semantics = [#tpu.dimension_semantics<parallel>], iteration_bounds = array<i64: 1>, scalar_prefetch = 0 : i64, scratch_operands = 0 : i64, tpu.core_type = #tpu.core_type<tc>, window_params = [{transform_indices = @transform_0, window_bounds = array<i64: 8, 16>}, {pipeline_mode = #tpu.pipeline_mode<synchronous>, transform_indices = @transform_1, window_bounds = array<i64: 16, 256>}, {pipeline_mode = #tpu.pipeline_mode<synchronous>, transform_indices = @transform_2, window_bounds = array<i64: 1, 256>}, {pipeline_mode = #tpu.pipeline_mode<synchronous>, transform_indices = @transform_3, window_bounds = array<i64: 256, 128>}, {pipeline_mode = #tpu.pipeline_mode<synchronous>, transform_indices = @transform_4, window_bounds = array<i64: 1, 128>}, {pipeline_mode = #tpu.pipeline_mode<synchronous>, transform_indices = @transform_5, window_bounds = array<i64: 128, 128>}, {pipeline_mode = #tpu.pipeline_mode<synchronous>, transform_indices = @transform_6, window_bounds = array<i64: 1, 128>}, {transform_indices = @transform_7, window_bounds = array<i64: 8, 128>}]} {
    %c0 = arith.constant 0 : index
    %c0_0 = arith.constant 0 : index
    %0 = vector.load %arg1[%c0, %c0_0] : memref<8x16xf32, #tpu.memory_space<vmem>>, vector<8x16xf32>
    %1 = arith.truncf %0 : vector<8x16xf32> to vector<8x16xbf16>
    %c0_1 = arith.constant 0 : index
    %c0_2 = arith.constant 0 : index
    %2 = vector.load %arg2[%c0_1, %c0_2] : memref<16x256xbf16, #tpu.memory_space<vmem>>, vector<16x256xbf16>
    %cst = arith.constant dense<0.000000e+00> : vector<8x256xf32>
    %3 = tpu.matmul %1, %2, %cst {dimension_numbers = #tpu.dot_dimension_numbers<[1], [0], [0], [1], [0, 0, 1, 1], [], []>} : vector<8x16xbf16>, vector<16x256xbf16>, vector<8x256xf32> -> vector<8x256xf32>
    %c0_3 = arith.constant 0 : index
    %c0_4 = arith.constant 0 : index
    %4 = vector.load %arg3[%c0_3, %c0_4] : memref<1x256xf32, #tpu.memory_space<vmem>>, vector<1x256xf32>
    %5 = vector.broadcast %4 : vector<1x256xf32> to vector<8x256xf32>
    %6 = arith.addf %3, %5 : vector<8x256xf32>
    %cst_5 = arith.constant 0.000000e+00 : f32
    %7 = vector.broadcast %cst_5 : f32 to vector<8x256xf32>
    %8 = arith.maximumf %6, %7 : vector<8x256xf32>
    %9 = arith.truncf %8 : vector<8x256xf32> to vector<8x256xbf16>
    %c0_6 = arith.constant 0 : index
    %c0_7 = arith.constant 0 : index
    %10 = vector.load %arg4[%c0_6, %c0_7] : memref<256x128xbf16, #tpu.memory_space<vmem>>, vector<256x128xbf16>
    %cst_8 = arith.constant dense<0.000000e+00> : vector<8x128xf32>
    %11 = tpu.matmul %9, %10, %cst_8 {dimension_numbers = #tpu.dot_dimension_numbers<[1], [0], [0], [1], [0, 0, 1, 1], [], []>} : vector<8x256xbf16>, vector<256x128xbf16>, vector<8x128xf32> -> vector<8x128xf32>
    %c0_9 = arith.constant 0 : index
    %c0_10 = arith.constant 0 : index
    %12 = vector.load %arg5[%c0_9, %c0_10] : memref<1x128xf32, #tpu.memory_space<vmem>>, vector<1x128xf32>
    %13 = vector.broadcast %12 : vector<1x128xf32> to vector<8x128xf32>
    %14 = arith.addf %11, %13 : vector<8x128xf32>
    %cst_11 = arith.constant 0.000000e+00 : f32
    %15 = vector.broadcast %cst_11 : f32 to vector<8x128xf32>
    %16 = arith.maximumf %14, %15 : vector<8x128xf32>
    %17 = arith.truncf %16 : vector<8x128xf32> to vector<8x128xbf16>
    %c0_12 = arith.constant 0 : index
    %c0_13 = arith.constant 0 : index
    %18 = vector.load %arg6[%c0_12, %c0_13] : memref<128x128xbf16, #tpu.memory_space<vmem>>, vector<128x128xbf16>
    %cst_14 = arith.constant dense<0.000000e+00> : vector<8x128xf32>
    %19 = tpu.matmul %17, %18, %cst_14 {dimension_numbers = #tpu.dot_dimension_numbers<[1], [0], [0], [1], [0, 0, 1, 1], [], []>} : vector<8x128xbf16>, vector<128x128xbf16>, vector<8x128xf32> -> vector<8x128xf32>
    %c0_15 = arith.constant 0 : index
    %c0_16 = arith.constant 0 : index
    %20 = vector.load %arg7[%c0_15, %c0_16] : memref<1x128xf32, #tpu.memory_space<vmem>>, vector<1x128xf32>
    %21 = vector.broadcast %20 : vector<1x128xf32> to vector<8x128xf32>
    %22 = arith.addf %19, %21 : vector<8x128xf32>
    %23 = arith.negf %22 : vector<8x128xf32>
    %24 = math.exp %23 : vector<8x128xf32>
    %cst_17 = arith.constant 1.000000e+00 : f32
    %25 = vector.broadcast %cst_17 : f32 to vector<8x128xf32>
    %26 = arith.addf %25, %24 : vector<8x128xf32>
    %27 = arith.divf %25, %26 : vector<8x128xf32>
    %28 = tpu.iota {dimensions = array<i32: 1>} : vector<1x128xi32>
    %c8_i32 = arith.constant 8 : i32
    %29 = vector.broadcast %c8_i32 : i32 to vector<1x128xi32>
    %30 = arith.cmpi slt, %28, %29 : vector<1x128xi32>
    %cst_18 = arith.constant 0.000000e+00 : f32
    %31 = vector.shape_cast %30 : vector<1x128xi1> to vector<1x128xi1>
    %32 = vector.broadcast %31 : vector<1x128xi1> to vector<8x128xi1>
    %33 = vector.broadcast %cst_18 : f32 to vector<8x128xf32>
    %34 = arith.select %32, %27, %33 : vector<8x128xi1>, vector<8x128xf32>
    %35 = arith.mulf %34, %34 : vector<8x128xf32>
    %cst_19 = arith.constant dense<0.000000e+00> : vector<8xf32>
    %36 = vector.multi_reduction <add>, %35, %cst_19 [1] : vector<8x128xf32> to vector<8xf32>
    %37 = vector.shape_cast %36 : vector<8xf32> to vector<8x1xf32>
    %cst_20 = arith.constant 1.000000e-24 : f32
    %38 = vector.broadcast %cst_20 : f32 to vector<8x1xf32>
    %39 = arith.maximumf %37, %38 : vector<8x1xf32>
    %40 = math.rsqrt %39 : vector<8x1xf32>
    %41 = vector.broadcast %40 : vector<8x1xf32> to vector<8x128xf32>
    %42 = arith.mulf %34, %41 : vector<8x128xf32>
    %c0_21 = arith.constant 0 : index
    %c0_22 = arith.constant 0 : index
    %43 = vector.load %arg8[%c0_21, %c0_22] : memref<8x128xf32, #tpu.memory_space<vmem>>, vector<8x128xf32>
    tpu.vector_store %arg8[%c0_21, %c0_22], %42 {strides = array<i32>} : memref<8x128xf32, #tpu.memory_space<vmem>>, vector<8x128xf32>,
    return
  }
  func.func @transform_0(%arg0: i32) -> (i32, i32) {
    %c0_i32 = arith.constant 0 : i32
    %c0_i32_0 = arith.constant 0 : i32
    return %arg0, %c0_i32 : i32, i32
  }
  func.func @transform_1(%arg0: i32) -> (i32, i32) {
    %c0_i32 = arith.constant 0 : i32
    %c0_i32_0 = arith.constant 0 : i32
    %c0_i32_1 = arith.constant 0 : i32
    return %c0_i32, %c0_i32_0 : i32, i32
  }
  func.func @transform_2(%arg0: i32) -> (i32, i32) {
    %c0_i32 = arith.constant 0 : i32
    %c0_i32_0 = arith.constant 0 : i32
    %c0_i32_1 = arith.constant 0 : i32
    return %c0_i32, %c0_i32_0 : i32, i32
  }
  func.func @transform_3(%arg0: i32) -> (i32, i32) {
    %c0_i32 = arith.constant 0 : i32
    %c0_i32_0 = arith.constant 0 : i32
    %c0_i32_1 = arith.constant 0 : i32
    return %c0_i32, %c0_i32_0 : i32, i32
  }
  func.func @transform_4(%arg0: i32) -> (i32, i32) {
    %c0_i32 = arith.constant 0 : i32
    %c0_i32_0 = arith.constant 0 : i32
    %c0_i32_1 = arith.constant 0 : i32
    return %c0_i32, %c0_i32_0 : i32, i32
  }
  func.func @transform_5(%arg0: i32) -> (i32, i32) {
    %c0_i32 = arith.constant 0 : i32
    %c0_i32_0 = arith.constant 0 : i32
    %c0_i32_1 = arith.constant 0 : i32
    return %c0_i32, %c0_i32_0 : i32, i32
  }
  func.func @transform_6(%arg0: i32) -> (i32, i32) {
    %c0_i32 = arith.constant 0 : i32
    %c0_i32_0 = arith.constant 0 : i32
    %c0_i32_1 = arith.constant 0 : i32
    return %c0_i32, %c0_i32_0 : i32, i32
  }
  func.func @transform_7(%arg0: i32) -> (i32, i32) {
    %c0_i32 = arith.constant 0 : i32
    %c0_i32_0 = arith.constant 0 : i32
    return %arg0, %c0_i32 : i32, i32
  }
}

</mosaic_0001>

<bundles_post_ra>
// kernel: policy_forward.1
= control target key start
LH: loop header
LB: loop body
LE: loop exit
PB: predicated region body
PF: predicated region fallthrough
CT: control target
= control target key end

     0   :  { %12 = vsyncpa [#allocation3], 0  ;;  %s845_s0 = inlined_call_operand.hbm [shape: f32[8,16], index: 0, kind: input, shape index: {}]   ;;  %s846_s1 = inlined_call_operand.hbm [shape: bf16[16,256], index: 1, kind: input, shape index: {}]   ;;  %s847_s2 = inlined_call_operand.vmem [shape: f32[1,256], index: 2, kind: input, shape index: {}]   ;;  %s848_s3 = inlined_call_operand.hbm [shape: bf16[256,128], index: 3, kind: input, shape index: {}]   ;;  %s849_s4 = inlined_call_operand.vmem [shape: f32[1,128], index: 4, kind: input, shape index: {}]   ;;  %s850_s5 = inlined_call_operand.hbm [shape: bf16[128,128], index: 5, kind: input, shape index: {}]   ;;  %s851_s6 = inlined_call_operand.vmem [shape: f32[1,128], index: 6, kind: input, shape index: {}]   ;;  %s852_s7 = inlined_call_operand.hbm [shape: f32[8,128], index: 7, kind: output, shape index: {}]  }
   0x1   :  { %13 = vsyncpa [#allocation6], 0 }
   0x2   :  { %14 = vsyncpa [#allocation9], 0 }
   0x3   :  { %15 = vsyncpa [#allocation4], 0  ;;  %s724_s24 = smov [#allocation5]   ;;  %s606_s28 = scalar_lea.hbm %s846_s1, 256 }
   0x4   :  { %s31_s25 = sshll.u32 %s724_s24, 4  ;;  %p607_p0 = scmp.ne.s32.totalorder %s846_s1, %s606_s28  ;;  %s32_s25 = int_to_ptr.vmem [resolvable:$true] %s31_s25 }
   0x5   :  { %p610_p1 = scmp.lt.u32.totalorder %s606_s28, %s846_s1 }
   0x7   :  { %p612_p2 = pnand %p610_p1, %p607_p0 }
   0x9   :  { %615 = shalt.err (!%p612_p2)
}
   0xa   :  { %s616_s10 = scalar_lea.vmem %s32_s25, 256  ;;  %p621_p4 = scmp.lt.s32.totalorder %s32_s25, %s32_s25 }
   0xb   :  { %p617_p3 = scmp.ne.s32.totalorder %s32_s25, %s616_s10  ;;  %p622_p5 = scmp.lt.s32.totalorder %s616_s10, %s616_s10 }
   0xd   :  { %p623_p6 = por %p622_p5, %p621_p4 }
   0xf   :  { %p624_p7 = pnand %p623_p6, %p617_p3 }
  0x11   :  { %627 = shalt.err (!%p624_p7)
}
  0x12   :  { %s725_s11 = smov 128   ;;  %s726_s12 = smov 8  }
  0x13   :  { %37 = dma.hbm_to_vmem [thread:$0]  %s846_s1, 256, %s32_s25, [#allocation6], %s725_s11, %s725_s11, %s726_s12  }
  0x14   :  { %s727_s15 = smov [#allocation2]   ;;  %s728_s17 = smov [#allocation7]  }
  0x15   :  { %s22_s16 = sshll.u32 %s727_s15, 4  ;;  %s45_s18 = sshll.u32 %s728_s17, 4  ;;  %s23_s16 = int_to_ptr.vmem [resolvable:$true] %s22_s16  ;;  %s46_s18 = int_to_ptr.vmem [resolvable:$true] %s45_s18 }
  0x16   :  { %s628_s21 = scalar_lea.hbm %s845_s0, 128 }
  0x17   :  { %p629_p8 = scmp.ne.s32.totalorder %s845_s0, %s628_s21  ;;  %p632_p9 = scmp.lt.u32.totalorder %s628_s21, %s845_s0 }
  0x19   :  { %p634_p10 = pnand %p632_p9, %p629_p8 }
  0x1b   :  { %637 = shalt.err (!%p634_p10)
}
  0x1c   :  { %s638_s1 = scalar_lea.vmem %s23_s16, 128  ;;  %p643_p12 = scmp.lt.s32.totalorder %s23_s16, %s23_s16 }
  0x1d   :  { %p639_p11 = scmp.ne.s32.totalorder %s23_s16, %s638_s1  ;;  %p644_p13 = scmp.lt.s32.totalorder %s638_s1, %s638_s1 }
  0x1f   :  { %p645_p0 = por %p644_p13, %p643_p12 }
  0x21   :  { %p646_p1 = pnand %p645_p0, %p639_p11 }
  0x23   :  { %649 = shalt.err (!%p646_p1)
}
  0x24   :  { %25 = dma.hbm_to_vmem [thread:$0]  %s845_s0, 128, %s23_s16, [#allocation3]  }
  0x25   :  { %s650_s30 = scalar_lea.hbm %s848_s3, 2048 }
  0x26   :  { %p651_p2 = scmp.ne.s32.totalorder %s848_s3, %s650_s30  ;;  %p654_p3 = scmp.lt.u32.totalorder %s650_s30, %s848_s3 }
  0x28   :  { %p656_p4 = pnand %p654_p3, %p651_p2 }
  0x2a   :  { %659 = shalt.err (!%p656_p4)
}
  0x2b   :  { %s660_s12 = scalar_lea.vmem %s46_s18, 2048  ;;  %p665_p6 = scmp.lt.s32.totalorder %s46_s18, %s46_s18 }
  0x2c   :  { %p661_p5 = scmp.ne.s32.totalorder %s46_s18, %s660_s12  ;;  %p666_p7 = scmp.lt.s32.totalorder %s660_s12, %s660_s12 }
  0x2e   :  { %p667_p8 = por %p666_p7, %p665_p6 }
  0x30   :  { %p668_p9 = pnand %p667_p8, %p661_p5 }
  0x32   :  { %671 = shalt.err (!%p668_p9)
}
  0x33   :  { %s729_s0 = smov 64   ;;  %s730_s13 = smov 4  }
  0x34   :  { %51 = dma.hbm_to_vmem [thread:$0]  %s848_s3, 2048, %s46_s18, [#allocation6], %s729_s0, %s729_s0, %s730_s13  }
  0x35   :  { %s731_s16 = smov [#allocation8]   ;;  %s672_s21 = scalar_lea.hbm %s850_s5, 1024 }
  0x36   :  { %s59_s17 = sshll.u32 %s731_s16, 4  ;;  %p673_p10 = scmp.ne.s32.totalorder %s850_s5, %s672_s21  ;;  %s60_s17 = int_to_ptr.vmem [resolvable:$true] %s59_s17 }
  0x37   :  { %p676_p11 = scmp.lt.u32.totalorder %s672_s21, %s850_s5 }
  0x39   :  { %p678_p12 = pnand %p676_p11, %p673_p10 }
  0x3b   :  { %681 = shalt.err (!%p678_p12)
}
  0x3c   :  { %s682_s1 = scalar_lea.vmem %s60_s17, 1024  ;;  %p687_p0 = scmp.lt.s32.totalorder %s60_s17, %s60_s17 }
  0x3d   :  { %p683_p13 = scmp.ne.s32.totalorder %s60_s17, %s682_s1  ;;  %p688_p1 = scmp.lt.s32.totalorder %s682_s1, %s682_s1 }
  0x3f   :  { %p689_p2 = por %p688_p1, %p687_p0 }
  0x41   :  { %p690_p3 = pnand %p689_p2, %p683_p13 }
  0x43   :  { %693 = shalt.err (!%p690_p3)
}
  0x44   :  { %65 = dma.hbm_to_vmem [thread:$0]  %s850_s5, 1024, %s60_s17, [#allocation9], %s729_s0, %s729_s0, %s730_s13  }
  0x45   :  { %716 = dma.done.wait [#allocation3], 128  }
  0x46   :  { %717 = vsyncadd [#allocation3], 4294967168 }
  0x47   :  { %718 = dma.done.wait [#allocation6], 2304  }
  0x48   :  { %719 = vsyncadd [#allocation6], 4294964992 }
  0x49   :  { %720 = dma.done.wait [#allocation9], 1024  }
  0x4a   :  { %721 = vsyncadd [#allocation9], 4294966272  ;;  %v732_v0 = vmov 0   ;;  %v573_v1 = vld [vmem:[#allocation5 + $0x4] ss:$8 sps:$4 sm:$0xff]   ;;  %v81_v3 = vld [vmem:[#allocation2] sm:$0xff]  ;;  %v87_v28 = vlaneseq }
  0x4b   :  { %143 = vmatprep.mubr.bf16.mxu0 %v732_v0  ;;  %v575_v2 = vld [vmem:[#allocation5] ss:$8 sps:$4 sm:$0xff]   ;;  %111 = vmatprep.subr.bf16.mxu0 %v573_v1  ;;  %v82_v4 = vpack.c.bf16 %v81_v3, %v81_v3  ;;  %v576_v5 = vld [vmem:[#allocation7 + $0x40] sm:$0xff]   ;;  %vm107_vm0 = vcmask 130048   ;;  %v578_v7 = vld [vmem:[#allocation7 + $0x48] sm:$0xff]   ;;  %v733_v22 = vmov 0.0  }
  0x4c   :  { %112 = vmatpush1.bf16.msra.mxu0 %v575_v2  ;;  %v577_v6 = vld [vmem:[#allocation7] sm:$0xff]   ;;  %510 = vmatprep.subr.bf16.mxu1 %v576_v5  ;;  %v579_v8 = vld [vmem:[#allocation7 + $0x8] sm:$0xff]   ;;  %v580_v9 = vld [vmem:[#allocation7 + $0x50] sm:$0xff]   ;;  %v88_v29 = vshrl.u32 %v87_v28, 7  ;;  %vm734_vm1 = vmmov 0   ;;  %v451_v1 = vand.u32 127, %v87_v28 }
  0x4d   :  { %511 = vmatpush3.bf16.msra.mxu1 %v577_v6  ;;  %v581_v10 = vld [vmem:[#allocation7 + $0x10] sm:$0xff]   ;;  %v582_v11 = vld [vmem:[#allocation7 + $0x58] sm:$0xff]   ;;  %v584_v13 = vld [vmem:[#allocation7 + $0x60] sm:$0xff]   ;;  %541 = vmatprep.subr.bf16.mxu0 %v733_v22 }
  0x4e   :  { %512 = vmatprep.subr.bf16.mxu1 %v578_v7  ;;  %v583_v12 = vld [vmem:[#allocation7 + $0x18] sm:$0xff]   ;;  %v585_v14 = vld [vmem:[#allocation7 + $0x20] sm:$0xff]   ;;  %v586_v15 = vld [vmem:[#allocation7 + $0x68] sm:$0xff]   ;;  %v89_v30 = vsub.s32 0, %v88_v29  ;;  %v93_v32 = vsub.s32 1, %v88_v29  ;;  %vm452_vm2 = vcmp.lt.s32.totalorder %v451_v1, 8 }
  0x4f   :  { %482 = vmatmul.mubr.msk.bf16.vlgmr.msra.gmra.mrb[0].mxu0 %vm107_vm0, %v82_v4  ;;  %v587_v16 = vld [vmem:[#allocation7 + $0x28] sm:$0xff]   ;;  %v588_v17 = vld [vmem:[#allocation7 + $0x70] sm:$0xff]   ;;  %v590_v19 = vld [vmem:[#allocation7 + $0x78] sm:$0xff]  }
  0x50   :  { %v589_v18 = vld [vmem:[#allocation7 + $0x30] sm:$0xff]   ;;  %v591_v20 = vld [vmem:[#allocation7 + $0x38] sm:$0xff]   ;;  %v592_v21 = vld [vmem:[#allocation8] sm:$0xff]   ;;  %557 = vmatprep.mubr.msk.bf16.mxu0 %vm734_vm1, %v733_v22 }
  0x51   :  { %513 = vmatpush3.bf16.msra.mxu1 %v579_v8  ;;  %542 = vmatpush3.bf16.msra.mxu0 %v592_v21  ;;  %v593_v23 = vld [vmem:[#allocation8 + $0x8] sm:$0xff]   ;;  %v594_v24 = vld [vmem:[#allocation8 + $0x10] sm:$0xff]   ;;  %v595_v25 = vld [vmem:[#allocation8 + $0x18] sm:$0xff]  }
  0x52   :  { %514 = vmatprep.subr.bf16.mxu1 %v580_v9  ;;  %543 = vmatprep.subr.bf16.mxu0 %v733_v22  ;;  %v596_v26 = vld [vmem:[#allocation8 + $0x20] sm:$0xff]   ;;  %v597_v27 = vld [vmem:[#allocation8 + $0x28] sm:$0xff]   ;;  %v598_v45 = vld [vmem:[#allocation8 + $0x30] sm:$0xff]  }
  0x53   :  { %v85_v31 = vld [vmem:[%s847_s2] sm:$0x3]  ;;  %v599_v46 = vld [vmem:[#allocation8 + $0x38] sm:$0xff]  }
  0x54   :  { %v90_v33 = vrot.slane %v85_v31, %v89_v30  ;;  %v94_v34 = vrot.slane %v85_v31, %v93_v32  ;;  %v483_v48 = vld [vmem:[%s849_s4] ss:$0 sm:$0xff]  ;;  %s735_s4 = smov [#allocation10]  }
  0x55   :  { %515 = vmatpush3.bf16.msra.mxu1 %v581_v10  ;;  %544 = vmatpush3.bf16.msra.mxu0 %v593_v23  ;;  %v500_v56 = vld [vmem:[%s851_s6] ss:$0 sm:$0xff]  ;;  %s469_s6 = sshll.u32 %s735_s4, 4  ;;  %s470_s6 = int_to_ptr.vmem [resolvable:$true] %s469_s6 }
  0x56   :  { %516 = vmatprep.subr.bf16.mxu1 %v582_v11  ;;  %545 = vmatprep.subr.bf16.mxu0 %v733_v22  ;;  %s694_s30 = scalar_lea.vmem %s470_s6, 128  ;;  %p699_p5 = scmp.lt.s32.totalorder %s470_s6, %s470_s6 }
  0x57   :  { %p695_p4 = scmp.ne.s32.totalorder %s470_s6, %s694_s30  ;;  %p700_p6 = scmp.lt.s32.totalorder %s694_s30, %s694_s30 }
  0x59   :  { %517 = vmatpush3.bf16.msra.mxu1 %v583_v12  ;;  %546 = vmatpush3.bf16.msra.mxu0 %v594_v24  ;;  %p701_p7 = por %p700_p6, %p699_p5 }
  0x5a   :  { %518 = vmatprep.subr.bf16.mxu1 %v584_v13  ;;  %547 = vmatprep.subr.bf16.mxu0 %v733_v22 }
  0x5b   :  { %p702_p8 = pnand %p701_p7, %p695_p4 }
  0x5d   :  { %519 = vmatpush3.bf16.msra.mxu1 %v585_v14  ;;  %548 = vmatpush3.bf16.msra.mxu0 %v595_v25 }
  0x5e   :  { %520 = vmatprep.subr.bf16.mxu1 %v586_v15  ;;  %549 = vmatprep.subr.bf16.mxu0 %v733_v22 }
  0x61   :  { %521 = vmatpush3.bf16.msra.mxu1 %v587_v16  ;;  %550 = vmatpush3.bf16.msra.mxu0 %v596_v26 }
  0x62   :  { %522 = vmatprep.subr.bf16.mxu1 %v588_v17  ;;  %551 = vmatprep.subr.bf16.mxu0 %v733_v22 }
  0x65   :  { %523 = vmatpush3.bf16.msra.mxu1 %v589_v18  ;;  %552 = vmatpush3.bf16.msra.mxu0 %v597_v27 }
  0x66   :  { %524 = vmatprep.subr.bf16.mxu1 %v590_v19  ;;  %553 = vmatprep.subr.bf16.mxu0 %v733_v22 }
  0x69   :  { %525 = vmatpush3.bf16.msra.mxu1 %v591_v20  ;;  %554 = vmatpush3.bf16.msra.mxu0 %v598_v45 }
  0x6a   :  { %555 = vmatprep.subr.bf16.mxu0 %v733_v22 }
  0x6d   :  { %556 = vmatpush3.bf16.msra.mxu0 %v599_v46 }
 0x122   :  { %v145_v35 = vpop.f32.mrb[0].mxu0 }
 0x123   :  { %v146_v36 = vadd.f32 %v145_v35, %v90_v33  ;;  %v147_v37 = vpop.f32.mrb[1].mxu0 }
 0x124   :  { %v148_v38 = vadd.f32 %v147_v37, %v94_v34  ;;  %v149_v39 = vpop.f32.mrb[2].mxu0 }
 0x125   :  { %v152_v40 = vmax.f32 %v146_v36, 0.0  ;;  %v150_v41 = vpop.f32.mrb[3].mxu0 }
 0x126   :  { %v153_v42 = vmax.f32 %v148_v38, 0.0 }
 0x127   :  { %v154_v44 = vpack.c.bf16 %v152_v40, %v152_v40 }
 0x128   :  { %v155_v43 = vpack.c.bf16 %v153_v42, %v153_v42 }
 0x12a   :  { %323 = vmatprep.mubr.bf16.mxu1 %v155_v43 }
 0x12b   :  { %324 = vmatmul.mubr.bf16.vlgmr.msra.gmra.mrb[0].mxu1 %v154_v44 }
 0x1fe   :  { %v526_v47 = vpop.f32.mrb[0].mxu1 }
 0x1ff   :  { %v527_v49 = vpop.f32.mrb[1].mxu1 }
 0x200   :  { %v528_v50 = vadd.f32 %v527_v49, %v526_v47  ;;  %v529_v51 = vpop.f32.mrb[2].mxu1 }
 0x201   :  { %v530_v52 = vpop.f32.mrb[3].mxu1 }
 0x202   :  { %v326_v53 = vadd.f32 %v528_v50, %v483_v48 }
 0x204   :  { %v331_v54 = vmax.f32 %v326_v53, 0.0 }
 0x206   :  { %v332_v55 = vpack.c.bf16 %v331_v54, %v331_v54 }
 0x208   :  { %558 = vmatmul.mubr.bf16.vlgmr.msra.gmra.mrb[4].mxu0 %v332_v55 }
 0x2db   :  { %v438_v57 = vpop.f32.mrb[4].mxu0 }
 0x2dc   :  { %v439_v58 = vadd.f32 %v500_v56, %v438_v57  ;;  %v559_v59 = vpop.f32.mrb[5].mxu0 }
 0x2dd   :  { %v441_v60 = vpop.f32.mrb[6].mxu0 }
 0x2de   :  { %v509_v61 = vmul.f32 -1.442695, %v439_v58  ;;  %v560_v62 = vpop.f32.mrb[7].mxu0 }
 0x2e0   :  { %600 = vpow2.f32 %v509_v61 }
 0x2ea   :  { %v601_v63 = vpop.eup %600 }
 0x2eb   :  { %v447_v0 = vadd.f32 1.0, %v601_v63 }
 0x2ed   :  { %602 = vrcp.f32 %v447_v0 }
 0x2f7   :  { %v603_v2 = vpop.eup %602 }
 0x2f8   :  { %v455_v3 = vsel %vm452_vm2, %v603_v2, 0.0 }
 0x2f9   :  { %v456_v4 = vmul.f32 %v455_v3, %v455_v3 }
 0x2fb   :  { %457 = vadd.xlane.f32.xlu0 %v456_v4 }
 0x388   :  { %v458_v5 = vpop.xlane.xlu0 %457 }
 0x389   :  { %v459_v6 = vmax.f32 %v458_v5, 1e-24 }
 0x38b   :  { %604 = vrsqrt.f32 %v459_v6 }
 0x395   :  { %v605_v7 = vpop.eup %604 }
 0x396   :  { %v461_v8 = vmul.f32 %v605_v7, %v455_v3 }
 0x398   :  { %462 = vst [vmem:[#allocation10] sm:$0xff] %v461_v8 }
 0x399   :  { %705 = shalt.err (!%p702_p8)
}
 0x39a   :  { %s706_s10 = scalar_lea.hbm %s852_s7, 128 }
 0x39b   :  { %p707_p9 = scmp.ne.s32.totalorder %s852_s7, %s706_s10  ;;  %p710_p10 = scmp.lt.u32.totalorder %s706_s10, %s852_s7 }
 0x39d   :  { %p712_p11 = pnand %p710_p10, %p707_p9 }
 0x39f   :  { %715 = shalt.err (!%p712_p11)
}
 0x3a0   :  { %472 = dma.vmem_to_hbm [thread:$0]  %s470_s6, 128, %s852_s7, [#allocation4]  }
 0x3a1   :  { %722 = dma.done.wait [#allocation4], 128  }
 0x3a2   :  { %723 = vsyncadd [#allocation4], 4294967168 }
 0x3a3   :  { %476 = vsyncpa [#allocation3], 1 }
 0x3a4   :  { %477 = vsyncpa [#allocation6], 1 }
 0x3a5   :  { %478 = vsyncpa [#allocation9], 1 }
 0x3a6   :  { %479 = vsyncpa [#allocation4], 1 }

</bundles_post_ra>
